<compile_context>
chip_gen: v6e
topology: v6e:2x2x1
jax: 0.10.0
libtpu: 0.0.40
codegen_flags: <defaults>
</compile_context>

<pallas_src>
import functools

import jax
import jax.numpy as jnp
from jax.experimental import pallas as pl
from jax.experimental.pallas import tpu as pltpu

EMB_DIM = 16
MULTI_VALUED = ('category', 'title', 'description')


# ----------------------------------------------------------------------------
# Kernel
# ----------------------------------------------------------------------------
def _fused_embedding_kernel(idx_ref, tables_ref, out_ref, *, feat_cfg):
    """Fused embedding lookup for all features of one batch tile.

    idx_ref:    (F, TB, L_max) int32    VMEM  (padded indices, all features)
    tables_ref: (F, V_max, D)  bf16/f32 VMEM  (padded, stacked tables; resident)
    out_ref:    (TB, F*D)      f32      VMEM  (lane-dense output slab)

    feat_cfg: static tuple of (seq_len, apply_mask, inv_divisor) per feature.
      single-valued: (1, False, 1.0)    -> out = table[idx]
      multi-valued : (L, True, 1.0/L)   -> out = mean_l(table[idx_l]*(idx_l!=0))
    """
    idx = idx_ref[...]                                    # (F, TB, L_max)
    TB = idx.shape[1]
    V = tables_ref.shape[1]
    iota_v = jax.lax.broadcasted_iota(jnp.int32, (TB, V), 1)

    outs = []
    for f, (seq_len, apply_mask, inv_div) in enumerate(feat_cfg):
        # Accumulate per-row one-hot weights over the (static, small) seq axis:
        #   w[b, v] = sum_l [idx[f,b,l] == v] (* [idx != 0] if masked)
        w = jnp.zeros((TB, V), jnp.float32)
        for l in range(seq_len):                          # static unroll
            idx_l = idx[f, :, l:l + 1]                    # (TB, 1)
            hit = iota_v == idx_l                         # (TB, V)
            if apply_mask:
                hit = jnp.logical_and(hit, idx_l != 0)    # fold pad mask
            w = w + hit.astype(jnp.float32)

        tbl = tables_ref[f]                               # (V, D)
        res = jnp.dot(w.astype(tbl.dtype), tbl,
                      preferred_element_type=jnp.float32)  # (TB, D) on MXU
        if inv_div != 1.0:
            res = res * inv_div                           # scale (TB, D), not (TB, V)
        outs.append(res)

    # Single lane-dense store of the whole feature slab.
    out_ref[...] = jnp.concatenate(outs, axis=-1).astype(out_ref.dtype)


# ----------------------------------------------------------------------------
# Wrappers
# ----------------------------------------------------------------------------
def _round_up(x, m):
    return (x + m - 1) // m * m


def pack_tables(tables, field, dtype=jnp.bfloat16):
    """Pad each (V_f, D) table to V_max rows and stack to (F, V_max, D). Do once."""
    v_max = max(tables[name].shape[0] for name in field)
    return jnp.stack(
        [jnp.pad(tables[name].astype(dtype),
                 ((0, v_max - tables[name].shape[0]), (0, 0)))
         for name in field], axis=0)


@functools.partial(jax.jit, static_argnames=('feat_cfg',))
def _fused_forward(idx_all, tables_packed, feat_cfg):
    F, B_pad, L_max = idx_all.shape
    _, V_max, D = tables_packed.shape
    TB = min(128, B_pad)                                   # batch tile (multiple of 8)
    grid = (B_pad // TB,)

    kernel = functools.partial(_fused_embedding_kernel, feat_cfg=feat_cfg)
    return pl.pallas_call(
        kernel,
        out_shape=jax.ShapeDtypeStruct((B_pad, F * D), jnp.float32),
        grid_spec=pltpu.PrefetchScalarGridSpec(
            num_scalar_prefetch=0,
            grid=grid,
            in_specs=[
                # Per-tile indices for all features.
                pl.BlockSpec((F, TB, L_max), lambda b: (0, b, 0)),
                # Stacked tables: constant index_map -> stays resident in VMEM.
                pl.BlockSpec((F, V_max, D), lambda b: (0, 0, 0)),
            ],
            out_specs=pl.BlockSpec((TB, F * D), lambda b: (b, 0)),
        ),
        compiler_params=pltpu.CompilerParams(
            dimension_semantics=("parallel",)),
    )(idx_all, tables_packed)


def embedding_forward(data, tables_packed, field, *, multi_valued=MULTI_VALUED):
    """Equivalent of Embedding.forward(data, mode='normal'). Returns [B, F, 16]."""
    F = len(field)
    D = tables_packed.shape[-1]

    raws, feat_cfg = [], []
    for name in field:
        raw = jnp.asarray(data[name], jnp.int32)
        if raw.ndim == 1:
            raw = raw[:, None]                             # single-valued -> L=1
        L_f = raw.shape[1]
        is_multi = name in multi_valued
        feat_cfg.append((L_f, bool(is_multi), (1.0 / L_f) if is_multi else 1.0))
        raws.append(raw)

    B = raws[0].shape[0]
    L_max = max(r.shape[1] for r in raws)
    TB = min(128, _round_up(B, 8))
    B_pad = _round_up(B, TB)

    # (F, B_pad, L_max); pad value 0 is harmless (masked for multi-valued,
    # padded batch rows are sliced off below).
    idx_all = jnp.stack(
        [jnp.pad(r, ((0, B_pad - B), (0, L_max - r.shape[1]))) for r in raws],
        axis=0)

    out = _fused_forward(idx_all, tables_packed, tuple(feat_cfg))  # (B_pad, F*D)
    return out[:B].reshape(B, F, D)


# ----------------------------------------------------------------------------
# Parameter init (xavier_uniform, deterministic) + demo
# ----------------------------------------------------------------------------
def make_tables(feature_stastic, key):
    tables, field = {}, []
    for feature, numb in feature_stastic.items():
        if feature == 'label':
            continue
        field.append(feature)
        V = numb + 1
        key, sub = jax.random.split(key)
        bound = (6.0 / (V + EMB_DIM)) ** 0.5               # xavier_uniform_
        tables[feature] = jax.random.uniform(
            sub, (V, EMB_DIM), jnp.float32, minval=-bound, maxval=bound)
    return tables, field


if __name__ == "__main__":
    key = jax.random.PRNGKey(0)

    # Config.feature_stastic analogue (vocab sizes per feature).
    feature_stastic = {
        'label': 2,
        'user_id': 50,
        'item_id': 60,
        'category': 30,
        'title': 40,
        'description': 20,
    }

    key, kt = jax.random.split(key)
    tables, field = make_tables(feature_stastic, kt)

    # bf16 storage: half the DMA bytes / VMEM, MXU-native with f32 accumulate.
    tables_packed = pack_tables(tables, field, dtype=jnp.bfloat16)

    B, L = 2, 8
    data = {}
    key, k = jax.random.split(key)
    data['label'] = jax.random.randint(k, (B,), 0, 2, dtype=jnp.int32)
    for name in field:
        V = feature_stastic[name] + 1
        key, k = jax.random.split(key)
        if name in MULTI_VALUED:
            # minval=0 so the (raw != 0) mask is exercised.
            data[name] = jax.random.randint(k, (B, L), 0, V, dtype=jnp.int32)
        else:
            data[name] = jax.random.randint(k, (B,), 0, V, dtype=jnp.int32)

    out = embedding_forward(data, tables_packed, field)
    jax.block_until_ready(out)
    assert out.shape == (B, len(field), EMB_DIM), out.shape

    # Pure-JAX reference of the same semantics, using the same (bf16-stored)
    # table values cast to f32.
    ref_out = []
    for f, name in enumerate(field):
        raw = data[name]
        V_f = tables[name].shape[0]
        tbl_f32 = tables_packed[f, :V_f].astype(jnp.float32)
        emb = tbl_f32[raw]
        if name in MULTI_VALUED:
            phase = jnp.mean(
                emb * (raw != 0)[:, :, None].astype(jnp.float32),
                axis=1, keepdims=True)
        else:
            phase = emb[:, None, :]
        ref_out.append(phase)
    ref = jnp.concatenate(ref_out, axis=-2)
    assert jnp.allclose(out, ref, atol=1e-5, rtol=1e-5)

    print("KERNEL_OK")
</pallas_src>

<mosaic_0001>
module attributes {stable_mosaic.version = 11 : i64} {
  func.func @_fused_embedding_kernel(%arg0: i32, %arg1: memref<5x8x8xi32, #tpu.memory_space<vmem>>, %arg2: memref<5x61x16xbf16, #tpu.memory_space<vmem>>, %arg3: memref<8x80xf32, #tpu.memory_space<vmem>>) attributes {dimension_semantics = [#tpu.dimension_semantics<parallel>], iteration_bounds = array<i64: 1>, scalar_prefetch = 0 : i64, scratch_operands = 0 : i64, tpu.core_type = #tpu.core_type<tc>, window_params = [{transform_indices = @transform_0, window_bounds = array<i64: 5, 8, 8>}, {pipeline_mode = #tpu.pipeline_mode<synchronous>, transform_indices = @transform_1, window_bounds = array<i64: 5, 61, 16>}, {transform_indices = @transform_2, window_bounds = array<i64: 8, 80>}]} {
    %c0 = arith.constant 0 : index
    %c0_0 = arith.constant 0 : index
    %c0_1 = arith.constant 0 : index
    %0 = vector.load %arg1[%c0, %c0_0, %c0_1] : memref<5x8x8xi32, #tpu.memory_space<vmem>>, vector<5x8x8xi32>
    %1 = tpu.iota {dimensions = array<i32: 1>} : vector<8x61xi32>
    %cst = arith.constant 0.000000e+00 : f32
    %2 = vector.broadcast %cst : f32 to vector<8x61xf32>
    %3 = vector.extract_strided_slice %0 {offsets = [0, 0, 0], sizes = [1, 8, 1], strides = [1, 1, 1]} : vector<5x8x8xi32> to vector<1x8x1xi32>
    %4 = vector.shape_cast %3 : vector<1x8x1xi32> to vector<8x1xi32>
    %5 = vector.broadcast %4 : vector<8x1xi32> to vector<8x61xi32>
    %6 = arith.cmpi eq, %1, %5 : vector<8x61xi32>
    %7 = arith.extui %6 : vector<8x61xi1> to vector<8x61xi32>
    %8 = arith.sitofp %7 : vector<8x61xi32> to vector<8x61xf32>
    %9 = arith.addf %2, %8 : vector<8x61xf32>
    %c0_2 = arith.constant 0 : index
    %c0_3 = arith.constant 0 : index
    %c0_4 = arith.constant 0 : index
    %10 = vector.load %arg2[%c0_2, %c0_3, %c0_4] : memref<5x61x16xbf16, #tpu.memory_space<vmem>>, vector<1x61x16xbf16>
    %11 = vector.shape_cast %10 : vector<1x61x16xbf16> to vector<61x16xbf16>
    %12 = arith.truncf %9 : vector<8x61xf32> to vector<8x61xbf16>
    %cst_5 = arith.constant dense<0.000000e+00> : vector<8x16xf32>
    %13 = tpu.matmul %12, %11, %cst_5 {dimension_numbers = #tpu.dot_dimension_numbers<[1], [0], [0], [1], [0, 0, 1, 1], [], []>} : vector<8x61xbf16>, vector<61x16xbf16>, vector<8x16xf32> -> vector<8x16xf32>
    %cst_6 = arith.constant 0.000000e+00 : f32
    %14 = vector.broadcast %cst_6 : f32 to vector<8x61xf32>
    %15 = vector.extract_strided_slice %0 {offsets = [1, 0, 0], sizes = [1, 8, 1], strides = [1, 1, 1]} : vector<5x8x8xi32> to vector<1x8x1xi32>
    %16 = vector.shape_cast %15 : vector<1x8x1xi32> to vector<8x1xi32>
    %17 = vector.broadcast %16 : vector<8x1xi32> to vector<8x61xi32>
    %18 = arith.cmpi eq, %1, %17 : vector<8x61xi32>
    %19 = arith.extui %18 : vector<8x61xi1> to vector<8x61xi32>
    %20 = arith.sitofp %19 : vector<8x61xi32> to vector<8x61xf32>
    %21 = arith.addf %14, %20 : vector<8x61xf32>
    %c1 = arith.constant 1 : index
    %c0_7 = arith.constant 0 : index
    %c0_8 = arith.constant 0 : index
    %22 = vector.load %arg2[%c1, %c0_7, %c0_8] : memref<5x61x16xbf16, #tpu.memory_space<vmem>>, vector<1x61x16xbf16>
    %23 = vector.shape_cast %22 : vector<1x61x16xbf16> to vector<61x16xbf16>
    %24 = arith.truncf %21 : vector<8x61xf32> to vector<8x61xbf16>
    %cst_9 = arith.constant dense<0.000000e+00> : vector<8x16xf32>
    %25 = tpu.matmul %24, %23, %cst_9 {dimension_numbers = #tpu.dot_dimension_numbers<[1], [0], [0], [1], [0, 0, 1, 1], [], []>} : vector<8x61xbf16>, vector<61x16xbf16>, vector<8x16xf32> -> vector<8x16xf32>
    %cst_10 = arith.constant 0.000000e+00 : f32
    %26 = vector.broadcast %cst_10 : f32 to vector<8x61xf32>
    %27 = vector.extract_strided_slice %0 {offsets = [2, 0, 0], sizes = [1, 8, 1], strides = [1, 1, 1]} : vector<5x8x8xi32> to vector<1x8x1xi32>
    %28 = vector.shape_cast %27 : vector<1x8x1xi32> to vector<8x1xi32>
    %29 = vector.broadcast %28 : vector<8x1xi32> to vector<8x61xi32>
    %30 = arith.cmpi eq, %1, %29 : vector<8x61xi32>
    %c0_i32 = arith.constant 0 : i32
    %31 = vector.broadcast %c0_i32 : i32 to vector<8x1xi32>
    %32 = arith.cmpi ne, %28, %31 : vector<8x1xi32>
    %33 = vector.broadcast %32 : vector<8x1xi1> to vector<8x61xi1>
    %34 = arith.andi %30, %33 : vector<8x61xi1>
    %35 = arith.extui %34 : vector<8x61xi1> to vector<8x61xi32>
    %36 = arith.sitofp %35 : vector<8x61xi32> to vector<8x61xf32>
    %37 = arith.addf %26, %36 : vector<8x61xf32>
    %38 = vector.extract_strided_slice %0 {offsets = [2, 0, 1], sizes = [1, 8, 1], strides = [1, 1, 1]} : vector<5x8x8xi32> to vector<1x8x1xi32>
    %39 = vector.shape_cast %38 : vector<1x8x1xi32> to vector<8x1xi32>
    %40 = vector.broadcast %39 : vector<8x1xi32> to vector<8x61xi32>
    %41 = arith.cmpi eq, %1, %40 : vector<8x61xi32>
    %c0_i32_11 = arith.constant 0 : i32
    %42 = vector.broadcast %c0_i32_11 : i32 to vector<8x1xi32>
    %43 = arith.cmpi ne, %39, %42 : vector<8x1xi32>
    %44 = vector.broadcast %43 : vector<8x1xi1> to vector<8x61xi1>
    %45 = arith.andi %41, %44 : vector<8x61xi1>
    %46 = arith.extui %45 : vector<8x61xi1> to vector<8x61xi32>
    %47 = arith.sitofp %46 : vector<8x61xi32> to vector<8x61xf32>
    %48 = arith.addf %37, %47 : vector<8x61xf32>
    %49 = vector.extract_strided_slice %0 {offsets = [2, 0, 2], sizes = [1, 8, 1], strides = [1, 1, 1]} : vector<5x8x8xi32> to vector<1x8x1xi32>
    %50 = vector.shape_cast %49 : vector<1x8x1xi32> to vector<8x1xi32>
    %51 = vector.broadcast %50 : vector<8x1xi32> to vector<8x61xi32>
    %52 = arith.cmpi eq, %1, %51 : vector<8x61xi32>
    %c0_i32_12 = arith.constant 0 : i32
    %53 = vector.broadcast %c0_i32_12 : i32 to vector<8x1xi32>
    %54 = arith.cmpi ne, %50, %53 : vector<8x1xi32>
    %55 = vector.broadcast %54 : vector<8x1xi1> to vector<8x61xi1>
    %56 = arith.andi %52, %55 : vector<8x61xi1>
    %57 = arith.extui %56 : vector<8x61xi1> to vector<8x61xi32>
    %58 = arith.sitofp %57 : vector<8x61xi32> to vector<8x61xf32>
    %59 = arith.addf %48, %58 : vector<8x61xf32>
    %60 = vector.extract_strided_slice %0 {offsets = [2, 0, 3], sizes = [1, 8, 1], strides = [1, 1, 1]} : vector<5x8x8xi32> to vector<1x8x1xi32>
    %61 = vector.shape_cast %60 : vector<1x8x1xi32> to vector<8x1xi32>
    %62 = vector.broadcast %61 : vector<8x1xi32> to vector<8x61xi32>
    %63 = arith.cmpi eq, %1, %62 : vector<8x61xi32>
    %c0_i32_13 = arith.constant 0 : i32
    %64 = vector.broadcast %c0_i32_13 : i32 to vector<8x1xi32>
    %65 = arith.cmpi ne, %61, %64 : vector<8x1xi32>
    %66 = vector.broadcast %65 : vector<8x1xi1> to vector<8x61xi1>
    %67 = arith.andi %63, %66 : vector<8x61xi1>
    %68 = arith.extui %67 : vector<8x61xi1> to vector<8x61xi32>
    %69 = arith.sitofp %68 : vector<8x61xi32> to vector<8x61xf32>
    %70 = arith.addf %59, %69 : vector<8x61xf32>
    %71 = vector.extract_strided_slice %0 {offsets = [2, 0, 4], sizes = [1, 8, 1], strides = [1, 1, 1]} : vector<5x8x8xi32> to vector<1x8x1xi32>
    %72 = vector.shape_cast %71 : vector<1x8x1xi32> to vector<8x1xi32>
    %73 = vector.broadcast %72 : vector<8x1xi32> to vector<8x61xi32>
    %74 = arith.cmpi eq, %1, %73 : vector<8x61xi32>
    %c0_i32_14 = arith.constant 0 : i32
    %75 = vector.broadcast %c0_i32_14 : i32 to vector<8x1xi32>
    %76 = arith.cmpi ne, %72, %75 : vector<8x1xi32>
    %77 = vector.broadcast %76 : vector<8x1xi1> to vector<8x61xi1>
    %78 = arith.andi %74, %77 : vector<8x61xi1>
    %79 = arith.extui %78 : vector<8x61xi1> to vector<8x61xi32>
    %80 = arith.sitofp %79 : vector<8x61xi32> to vector<8x61xf32>
    %81 = arith.addf %70, %80 : vector<8x61xf32>
    %82 = vector.extract_strided_slice %0 {offsets = [2, 0, 5], sizes = [1, 8, 1], strides = [1, 1, 1]} : vector<5x8x8xi32> to vector<1x8x1xi32>
    %83 = vector.shape_cast %82 : vector<1x8x1xi32> to vector<8x1xi32>
    %84 = vector.broadcast %83 : vector<8x1xi32> to vector<8x61xi32>
    %85 = arith.cmpi eq, %1, %84 : vector<8x61xi32>
    %c0_i32_15 = arith.constant 0 : i32
    %86 = vector.broadcast %c0_i32_15 : i32 to vector<8x1xi32>
    %87 = arith.cmpi ne, %83, %86 : vector<8x1xi32>
    %88 = vector.broadcast %87 : vector<8x1xi1> to vector<8x61xi1>
    %89 = arith.andi %85, %88 : vector<8x61xi1>
    %90 = arith.extui %89 : vector<8x61xi1> to vector<8x61xi32>
    %91 = arith.sitofp %90 : vector<8x61xi32> to vector<8x61xf32>
    %92 = arith.addf %81, %91 : vector<8x61xf32>
    %93 = vector.extract_strided_slice %0 {offsets = [2, 0, 6], sizes = [1, 8, 1], strides = [1, 1, 1]} : vector<5x8x8xi32> to vector<1x8x1xi32>
    %94 = vector.shape_cast %93 : vector<1x8x1xi32> to vector<8x1xi32>
    %95 = vector.broadcast %94 : vector<8x1xi32> to vector<8x61xi32>
    %96 = arith.cmpi eq, %1, %95 : vector<8x61xi32>
    %c0_i32_16 = arith.constant 0 : i32
    %97 = vector.broadcast %c0_i32_16 : i32 to vector<8x1xi32>
    %98 = arith.cmpi ne, %94, %97 : vector<8x1xi32>
    %99 = vector.broadcast %98 : vector<8x1xi1> to vector<8x61xi1>
    %100 = arith.andi %96, %99 : vector<8x61xi1>
    %101 = arith.extui %100 : vector<8x61xi1> to vector<8x61xi32>
    %102 = arith.sitofp %101 : vector<8x61xi32> to vector<8x61xf32>
    %103 = arith.addf %92, %102 : vector<8x61xf32>
    %104 = vector.extract_strided_slice %0 {offsets = [2, 0, 7], sizes = [1, 8, 1], strides = [1, 1, 1]} : vector<5x8x8xi32> to vector<1x8x1xi32>
    %105 = vector.shape_cast %104 : vector<1x8x1xi32> to vector<8x1xi32>
    %106 = vector.broadcast %105 : vector<8x1xi32> to vector<8x61xi32>
    %107 = arith.cmpi eq, %1, %106 : vector<8x61xi32>
    %c0_i32_17 = arith.constant 0 : i32
    %108 = vector.broadcast %c0_i32_17 : i32 to vector<8x1xi32>
    %109 = arith.cmpi ne, %105, %108 : vector<8x1xi32>
    %110 = vector.broadcast %109 : vector<8x1xi1> to vector<8x61xi1>
    %111 = arith.andi %107, %110 : vector<8x61xi1>
    %112 = arith.extui %111 : vector<8x61xi1> to vector<8x61xi32>
    %113 = arith.sitofp %112 : vector<8x61xi32> to vector<8x61xf32>
    %114 = arith.addf %103, %113 : vector<8x61xf32>
    %c2 = arith.constant 2 : index
    %c0_18 = arith.constant 0 : index
    %c0_19 = arith.constant 0 : index
    %115 = vector.load %arg2[%c2, %c0_18, %c0_19] : memref<5x61x16xbf16, #tpu.memory_space<vmem>>, vector<1x61x16xbf16>
    %116 = vector.shape_cast %115 : vector<1x61x16xbf16> to vector<61x16xbf16>
    %117 = arith.truncf %114 : vector<8x61xf32> to vector<8x61xbf16>
    %cst_20 = arith.constant dense<0.000000e+00> : vector<8x16xf32>
    %118 = tpu.matmul %117, %116, %cst_20 {dimension_numbers = #tpu.dot_dimension_numbers<[1], [0], [0], [1], [0, 0, 1, 1], [], []>} : vector<8x61xbf16>, vector<61x16xbf16>, vector<8x16xf32> -> vector<8x16xf32>
    %cst_21 = arith.constant 1.250000e-01 : f32
    %119 = vector.broadcast %cst_21 : f32 to vector<8x16xf32>
    %120 = arith.mulf %118, %119 : vector<8x16xf32>
    %cst_22 = arith.constant 0.000000e+00 : f32
    %121 = vector.broadcast %cst_22 : f32 to vector<8x61xf32>
    %122 = vector.extract_strided_slice %0 {offsets = [3, 0, 0], sizes = [1, 8, 1], strides = [1, 1, 1]} : vector<5x8x8xi32> to vector<1x8x1xi32>
    %123 = vector.shape_cast %122 : vector<1x8x1xi32> to vector<8x1xi32>
    %124 = vector.broadcast %123 : vector<8x1xi32> to vector<8x61xi32>
    %125 = arith.cmpi eq, %1, %124 : vector<8x61xi32>
    %c0_i32_23 = arith.constant 0 : i32
    %126 = vector.broadcast %c0_i32_23 : i32 to vector<8x1xi32>
    %127 = arith.cmpi ne, %123, %126 : vector<8x1xi32>
    %128 = vector.broadcast %127 : vector<8x1xi1> to vector<8x61xi1>
    %129 = arith.andi %125, %128 : vector<8x61xi1>
    %130 = arith.extui %129 : vector<8x61xi1> to vector<8x61xi32>
    %131 = arith.sitofp %130 : vector<8x61xi32> to vector<8x61xf32>
    %132 = arith.addf %121, %131 : vector<8x61xf32>
    %133 = vector.extract_strided_slice %0 {offsets = [3, 0, 1], sizes = [1, 8, 1], strides = [1, 1, 1]} : vector<5x8x8xi32> to vector<1x8x1xi32>
    %134 = vector.shape_cast %133 : vector<1x8x1xi32> to vector<8x1xi32>
    %135 = vector.broadcast %134 : vector<8x1xi32> to vector<8x61xi32>
    %136 = arith.cmpi eq, %1, %135 : vector<8x61xi32>
    %c0_i32_24 = arith.constant 0 : i32
    %137 = vector.broadcast %c0_i32_24 : i32 to vector<8x1xi32>
    %138 = arith.cmpi ne, %134, %137 : vector<8x1xi32>
    %139 = vector.broadcast %138 : vector<8x1xi1> to vector<8x61xi1>
    %140 = arith.andi %136, %139 : vector<8x61xi1>
    %141 = arith.extui %140 : vector<8x61xi1> to vector<8x61xi32>
    %142 = arith.sitofp %141 : vector<8x61xi32> to vector<8x61xf32>
    %143 = arith.addf %132, %142 : vector<8x61xf32>
    %144 = vector.extract_strided_slice %0 {offsets = [3, 0, 2], sizes = [1, 8, 1], strides = [1, 1, 1]} : vector<5x8x8xi32> to vector<1x8x1xi32>
    %145 = vector.shape_cast %144 : vector<1x8x1xi32> to vector<8x1xi32>
    %146 = vector.broadcast %145 : vector<8x1xi32> to vector<8x61xi32>
    %147 = arith.cmpi eq, %1, %146 : vector<8x61xi32>
    %c0_i32_25 = arith.constant 0 : i32
    %148 = vector.broadcast %c0_i32_25 : i32 to vector<8x1xi32>
    %149 = arith.cmpi ne, %145, %148 : vector<8x1xi32>
    %150 = vector.broadcast %149 : vector<8x1xi1> to vector<8x61xi1>
    %151 = arith.andi %147, %150 : vector<8x61xi1>
    %152 = arith.extui %151 : vector<8x61xi1> to vector<8x61xi32>
    %153 = arith.sitofp %152 : vector<8x61xi32> to vector<8x61xf32>
    %154 = arith.addf %143, %153 : vector<8x61xf32>
    %155 = vector.extract_strided_slice %0 {offsets = [3, 0, 3], sizes = [1, 8, 1], strides = [1, 1, 1]} : vector<5x8x8xi32> to vector<1x8x1xi32>
    %156 = vector.shape_cast %155 : vector<1x8x1xi32> to vector<8x1xi32>
    %157 = vector.broadcast %156 : vector<8x1xi32> to vector<8x61xi32>
    %158 = arith.cmpi eq, %1, %157 : vector<8x61xi32>
    %c0_i32_26 = arith.constant 0 : i32
    %159 = vector.broadcast %c0_i32_26 : i32 to vector<8x1xi32>
    %160 = arith.cmpi ne, %156, %159 : vector<8x1xi32>
    %161 = vector.broadcast %160 : vector<8x1xi1> to vector<8x61xi1>
    %162 = arith.andi %158, %161 : vector<8x61xi1>
    %163 = arith.extui %162 : vector<8x61xi1> to vector<8x61xi32>
    %164 = arith.sitofp %163 : vector<8x61xi32> to vector<8x61xf32>
    %165 = arith.addf %154, %164 : vector<8x61xf32>
    %166 = vector.extract_strided_slice %0 {offsets = [3, 0, 4], sizes = [1, 8, 1], strides = [1, 1, 1]} : vector<5x8x8xi32> to vector<1x8x1xi32>
    %167 = vector.shape_cast %166 : vector<1x8x1xi32> to vector<8x1xi32>
    %168 = vector.broadcast %167 : vector<8x1xi32> to vector<8x61xi32>
    %169 = arith.cmpi eq, %1, %168 : vector<8x61xi32>
    %c0_i32_27 = arith.constant 0 : i32
    %170 = vector.broadcast %c0_i32_27 : i32 to vector<8x1xi32>
    %171 = arith.cmpi ne, %167, %170 : vector<8x1xi32>
    %172 = vector.broadcast %171 : vector<8x1xi1> to vector<8x61xi1>
    %173 = arith.andi %169, %172 : vector<8x61xi1>
    %174 = arith.extui %173 : vector<8x61xi1> to vector<8x61xi32>
    %175 = arith.sitofp %174 : vector<8x61xi32> to vector<8x61xf32>
    %176 = arith.addf %165, %175 : vector<8x61xf32>
    %177 = vector.extract_strided_slice %0 {offsets = [3, 0, 5], sizes = [1, 8, 1], strides = [1, 1, 1]} : vector<5x8x8xi32> to vector<1x8x1xi32>
    %178 = vector.shape_cast %177 : vector<1x8x1xi32> to vector<8x1xi32>
    %179 = vector.broadcast %178 : vector<8x1xi32> to vector<8x61xi32>
    %180 = arith.cmpi eq, %1, %179 : vector<8x61xi32>
    %c0_i32_28 = arith.constant 0 : i32
    %181 = vector.broadcast %c0_i32_28 : i32 to vector<8x1xi32>
    %182 = arith.cmpi ne, %178, %181 : vector<8x1xi32>
    %183 = vector.broadcast %182 : vector<8x1xi1> to vector<8x61xi1>
    %184 = arith.andi %180, %183 : vector<8x61xi1>
    %185 = arith.extui %184 : vector<8x61xi1> to vector<8x61xi32>
    %186 = arith.sitofp %185 : vector<8x61xi32> to vector<8x61xf32>
    %187 = arith.addf %176, %186 : vector<8x61xf32>
    %188 = vector.extract_strided_slice %0 {offsets = [3, 0, 6], sizes = [1, 8, 1], strides = [1, 1, 1]} : vector<5x8x8xi32> to vector<1x8x1xi32>
    %189 = vector.shape_cast %188 : vector<1x8x1xi32> to vector<8x1xi32>
    %190 = vector.broadcast %189 : vector<8x1xi32> to vector<8x61xi32>
    %191 = arith.cmpi eq, %1, %190 : vector<8x61xi32>
    %c0_i32_29 = arith.constant 0 : i32
    %192 = vector.broadcast %c0_i32_29 : i32 to vector<8x1xi32>
    %193 = arith.cmpi ne, %189, %192 : vector<8x1xi32>
    %194 = vector.broadcast %193 : vector<8x1xi1> to vector<8x61xi1>
    %195 = arith.andi %191, %194 : vector<8x61xi1>
    %196 = arith.extui %195 : vector<8x61xi1> to vector<8x61xi32>
    %197 = arith.sitofp %196 : vector<8x61xi32> to vector<8x61xf32>
    %198 = arith.addf %187, %197 : vector<8x61xf32>
    %199 = vector.extract_strided_slice %0 {offsets = [3, 0, 7], sizes = [1, 8, 1], strides = [1, 1, 1]} : vector<5x8x8xi32> to vector<1x8x1xi32>
    %200 = vector.shape_cast %199 : vector<1x8x1xi32> to vector<8x1xi32>
    %201 = vector.broadcast %200 : vector<8x1xi32> to vector<8x61xi32>
    %202 = arith.cmpi eq, %1, %201 : vector<8x61xi32>
    %c0_i32_30 = arith.constant 0 : i32
    %203 = vector.broadcast %c0_i32_30 : i32 to vector<8x1xi32>
    %204 = arith.cmpi ne, %200, %203 : vector<8x1xi32>
    %205 = vector.broadcast %204 : vector<8x1xi1> to vector<8x61xi1>
    %206 = arith.andi %202, %205 : vector<8x61xi1>
    %207 = arith.extui %206 : vector<8x61xi1> to vector<8x61xi32>
    %208 = arith.sitofp %207 : vector<8x61xi32> to vector<8x61xf32>
    %209 = arith.addf %198, %208 : vector<8x61xf32>
    %c3 = arith.constant 3 : index
    %c0_31 = arith.constant 0 : index
    %c0_32 = arith.constant 0 : index
    %210 = vector.load %arg2[%c3, %c0_31, %c0_32] : memref<5x61x16xbf16, #tpu.memory_space<vmem>>, vector<1x61x16xbf16>
    %211 = vector.shape_cast %210 : vector<1x61x16xbf16> to vector<61x16xbf16>
    %212 = arith.truncf %209 : vector<8x61xf32> to vector<8x61xbf16>
    %cst_33 = arith.constant dense<0.000000e+00> : vector<8x16xf32>
    %213 = tpu.matmul %212, %211, %cst_33 {dimension_numbers = #tpu.dot_dimension_numbers<[1], [0], [0], [1], [0, 0, 1, 1], [], []>} : vector<8x61xbf16>, vector<61x16xbf16>, vector<8x16xf32> -> vector<8x16xf32>
    %cst_34 = arith.constant 1.250000e-01 : f32
    %214 = vector.broadcast %cst_34 : f32 to vector<8x16xf32>
    %215 = arith.mulf %213, %214 : vector<8x16xf32>
    %cst_35 = arith.constant 0.000000e+00 : f32
    %216 = vector.broadcast %cst_35 : f32 to vector<8x61xf32>
    %217 = vector.extract_strided_slice %0 {offsets = [4, 0, 0], sizes = [1, 8, 1], strides = [1, 1, 1]} : vector<5x8x8xi32> to vector<1x8x1xi32>
    %218 = vector.shape_cast %217 : vector<1x8x1xi32> to vector<8x1xi32>
    %219 = vector.broadcast %218 : vector<8x1xi32> to vector<8x61xi32>
    %220 = arith.cmpi eq, %1, %219 : vector<8x61xi32>
    %c0_i32_36 = arith.constant 0 : i32
    %221 = vector.broadcast %c0_i32_36 : i32 to vector<8x1xi32>
    %222 = arith.cmpi ne, %218, %221 : vector<8x1xi32>
    %223 = vector.broadcast %222 : vector<8x1xi1> to vector<8x61xi1>
    %224 = arith.andi %220, %223 : vector<8x61xi1>
    %225 = arith.extui %224 : vector<8x61xi1> to vector<8x61xi32>
    %226 = arith.sitofp %225 : vector<8x61xi32> to vector<8x61xf32>
    %227 = arith.addf %216, %226 : vector<8x61xf32>
    %228 = vector.extract_strided_slice %0 {offsets = [4, 0, 1], sizes = [1, 8, 1], strides = [1, 1, 1]} : vector<5x8x8xi32> to vector<1x8x1xi32>
    %229 = vector.shape_cast %228 : vector<1x8x1xi32> to vector<8x1xi32>
    %230 = vector.broadcast %229 : vector<8x1xi32> to vector<8x61xi32>
    %231 = arith.cmpi eq, %1, %230 : vector<8x61xi32>
    %c0_i32_37 = arith.constant 0 : i32
    %232 = vector.broadcast %c0_i32_37 : i32 to vector<8x1xi32>
    %233 = arith.cmpi ne, %229, %232 : vector<8x1xi32>
    %234 = vector.broadcast %233 : vector<8x1xi1> to vector<8x61xi1>
    %235 = arith.andi %231, %234 : vector<8x61xi1>
    %236 = arith.extui %235 : vector<8x61xi1> to vector<8x61xi32>
    %237 = arith.sitofp %236 : vector<8x61xi32> to vector<8x61xf32>
    %238 = arith.addf %227, %237 : vector<8x61xf32>
    %239 = vector.extract_strided_slice %0 {offsets = [4, 0, 2], sizes = [1, 8, 1], strides = [1, 1, 1]} : vector<5x8x8xi32> to vector<1x8x1xi32>
    %240 = vector.shape_cast %239 : vector<1x8x1xi32> to vector<8x1xi32>
    %241 = vector.broadcast %240 : vector<8x1xi32> to vector<8x61xi32>
    %242 = arith.cmpi eq, %1, %241 : vector<8x61xi32>
    %c0_i32_38 = arith.constant 0 : i32
    %243 = vector.broadcast %c0_i32_38 : i32 to vector<8x1xi32>
    %244 = arith.cmpi ne, %240, %243 : vector<8x1xi32>
    %245 = vector.broadcast %244 : vector<8x1xi1> to vector<8x61xi1>
    %246 = arith.andi %242, %245 : vector<8x61xi1>
    %247 = arith.extui %246 : vector<8x61xi1> to vector<8x61xi32>
    %248 = arith.sitofp %247 : vector<8x61xi32> to vector<8x61xf32>
    %249 = arith.addf %238, %248 : vector<8x61xf32>
    %250 = vector.extract_strided_slice %0 {offsets = [4, 0, 3], sizes = [1, 8, 1], strides = [1, 1, 1]} : vector<5x8x8xi32> to vector<1x8x1xi32>
    %251 = vector.shape_cast %250 : vector<1x8x1xi32> to vector<8x1xi32>
    %252 = vector.broadcast %251 : vector<8x1xi32> to vector<8x61xi32>
    %253 = arith.cmpi eq, %1, %252 : vector<8x61xi32>
    %c0_i32_39 = arith.constant 0 : i32
    %254 = vector.broadcast %c0_i32_39 : i32 to vector<8x1xi32>
    %255 = arith.cmpi ne, %251, %254 : vector<8x1xi32>
    %256 = vector.broadcast %255 : vector<8x1xi1> to vector<8x61xi1>
    %257 = arith.andi %253, %256 : vector<8x61xi1>
    %258 = arith.extui %257 : vector<8x61xi1> to vector<8x61xi32>
    %259 = arith.sitofp %258 : vector<8x61xi32> to vector<8x61xf32>
    %260 = arith.addf %249, %259 : vector<8x61xf32>
    %261 = vector.extract_strided_slice %0 {offsets = [4, 0, 4], sizes = [1, 8, 1], strides = [1, 1, 1]} : vector<5x8x8xi32> to vector<1x8x1xi32>
    %262 = vector.shape_cast %261 : vector<1x8x1xi32> to vector<8x1xi32>
    %263 = vector.broadcast %262 : vector<8x1xi32> to vector<8x61xi32>
    %264 = arith.cmpi eq, %1, %263 : vector<8x61xi32>
    %c0_i32_40 = arith.constant 0 : i32
    %265 = vector.broadcast %c0_i32_40 : i32 to vector<8x1xi32>
    %266 = arith.cmpi ne, %262, %265 : vector<8x1xi32>
    %267 = vector.broadcast %266 : vector<8x1xi1> to vector<8x61xi1>
    %268 = arith.andi %264, %267 : vector<8x61xi1>
    %269 = arith.extui %268 : vector<8x61xi1> to vector<8x61xi32>
    %270 = arith.sitofp %269 : vector<8x61xi32> to vector<8x61xf32>
    %271 = arith.addf %260, %270 : vector<8x61xf32>
    %272 = vector.extract_strided_slice %0 {offsets = [4, 0, 5], sizes = [1, 8, 1], strides = [1, 1, 1]} : vector<5x8x8xi32> to vector<1x8x1xi32>
    %273 = vector.shape_cast %272 : vector<1x8x1xi32> to vector<8x1xi32>
    %274 = vector.broadcast %273 : vector<8x1xi32> to vector<8x61xi32>
    %275 = arith.cmpi eq, %1, %274 : vector<8x61xi32>
    %c0_i32_41 = arith.constant 0 : i32
    %276 = vector.broadcast %c0_i32_41 : i32 to vector<8x1xi32>
    %277 = arith.cmpi ne, %273, %276 : vector<8x1xi32>
    %278 = vector.broadcast %277 : vector<8x1xi1> to vector<8x61xi1>
    %279 = arith.andi %275, %278 : vector<8x61xi1>
    %280 = arith.extui %279 : vector<8x61xi1> to vector<8x61xi32>
    %281 = arith.sitofp %280 : vector<8x61xi32> to vector<8x61xf32>
    %282 = arith.addf %271, %281 : vector<8x61xf32>
    %283 = vector.extract_strided_slice %0 {offsets = [4, 0, 6], sizes = [1, 8, 1], strides = [1, 1, 1]} : vector<5x8x8xi32> to vector<1x8x1xi32>
    %284 = vector.shape_cast %283 : vector<1x8x1xi32> to vector<8x1xi32>
    %285 = vector.broadcast %284 : vector<8x1xi32> to vector<8x61xi32>
    %286 = arith.cmpi eq, %1, %285 : vector<8x61xi32>
    %c0_i32_42 = arith.constant 0 : i32
    %287 = vector.broadcast %c0_i32_42 : i32 to vector<8x1xi32>
    %288 = arith.cmpi ne, %284, %287 : vector<8x1xi32>
    %289 = vector.broadcast %288 : vector<8x1xi1> to vector<8x61xi1>
    %290 = arith.andi %286, %289 : vector<8x61xi1>
    %291 = arith.extui %290 : vector<8x61xi1> to vector<8x61xi32>
    %292 = arith.sitofp %291 : vector<8x61xi32> to vector<8x61xf32>
    %293 = arith.addf %282, %292 : vector<8x61xf32>
    %294 = vector.extract_strided_slice %0 {offsets = [4, 0, 7], sizes = [1, 8, 1], strides = [1, 1, 1]} : vector<5x8x8xi32> to vector<1x8x1xi32>
    %295 = vector.shape_cast %294 : vector<1x8x1xi32> to vector<8x1xi32>
    %296 = vector.broadcast %295 : vector<8x1xi32> to vector<8x61xi32>
    %297 = arith.cmpi eq, %1, %296 : vector<8x61xi32>
    %c0_i32_43 = arith.constant 0 : i32
    %298 = vector.broadcast %c0_i32_43 : i32 to vector<8x1xi32>
    %299 = arith.cmpi ne, %295, %298 : vector<8x1xi32>
    %300 = vector.broadcast %299 : vector<8x1xi1> to vector<8x61xi1>
    %301 = arith.andi %297, %300 : vector<8x61xi1>
    %302 = arith.extui %301 : vector<8x61xi1> to vector<8x61xi32>
    %303 = arith.sitofp %302 : vector<8x61xi32> to vector<8x61xf32>
    %304 = arith.addf %293, %303 : vector<8x61xf32>
    %c4 = arith.constant 4 : index
    %c0_44 = arith.constant 0 : index
    %c0_45 = arith.constant 0 : index
    %305 = vector.load %arg2[%c4, %c0_44, %c0_45] : memref<5x61x16xbf16, #tpu.memory_space<vmem>>, vector<1x61x16xbf16>
    %306 = vector.shape_cast %305 : vector<1x61x16xbf16> to vector<61x16xbf16>
    %307 = arith.truncf %304 : vector<8x61xf32> to vector<8x61xbf16>
    %cst_46 = arith.constant dense<0.000000e+00> : vector<8x16xf32>
    %308 = tpu.matmul %307, %306, %cst_46 {dimension_numbers = #tpu.dot_dimension_numbers<[1], [0], [0], [1], [0, 0, 1, 1], [], []>} : vector<8x61xbf16>, vector<61x16xbf16>, vector<8x16xf32> -> vector<8x16xf32>
    %cst_47 = arith.constant 1.250000e-01 : f32
    %309 = vector.broadcast %cst_47 : f32 to vector<8x16xf32>
    %310 = arith.mulf %308, %309 : vector<8x16xf32>
    %311 = tpu.concatenate %13, %25, %120, %215, %310 in 1 : vector<8x16xf32>, vector<8x16xf32>, vector<8x16xf32>, vector<8x16xf32>, vector<8x16xf32> -> vector<8x80xf32>
    %c0_48 = arith.constant 0 : index
    %c0_49 = arith.constant 0 : index
    %312 = vector.load %arg3[%c0_48, %c0_49] : memref<8x80xf32, #tpu.memory_space<vmem>>, vector<8x80xf32>
    tpu.vector_store %arg3[%c0_48, %c0_49], %311 {strides = array<i32>} : memref<8x80xf32, #tpu.memory_space<vmem>>, vector<8x80xf32>,
    return
  }
  func.func @transform_0(%arg0: i32) -> (i32, i32, i32) {
    %c0_i32 = arith.constant 0 : i32
    %c0_i32_0 = arith.constant 0 : i32
    %c0_i32_1 = arith.constant 0 : i32
    return %c0_i32, %arg0, %c0_i32_0 : i32, i32, i32
  }
  func.func @transform_1(%arg0: i32) -> (i32, i32, i32) {
    %c0_i32 = arith.constant 0 : i32
    %c0_i32_0 = arith.constant 0 : i32
    %c0_i32_1 = arith.constant 0 : i32
    %c0_i32_2 = arith.constant 0 : i32
    return %c0_i32, %c0_i32_0, %c0_i32_1 : i32, i32, i32
  }
  func.func @transform_2(%arg0: i32) -> (i32, i32) {
    %c0_i32 = arith.constant 0 : i32
    %c0_i32_0 = arith.constant 0 : i32
    return %arg0, %c0_i32 : i32, i32
  }
}

</mosaic_0001>

<bundles_post_ra>
// kernel: _fused_forward.1
= control target key start
LH: loop header
LB: loop body
LE: loop exit
PB: predicated region body
PF: predicated region fallthrough
CT: control target
= control target key end

     0   :  { %v1024_v1 = vmov 6   ;;  %v1025_v2 = vmov 0   ;;  %v1026_v5 = vmov 7   ;;  %v1027_v6 = vmov 1   ;;  %s1337_s0 = inlined_call_operand.vmem [shape: s32[5,8,8], index: 0, kind: input, shape index: {}]   ;;  %s1338_s1 = inlined_call_operand.vmem [shape: bf16[5,61,16], index: 1, kind: input, shape index: {}]   ;;  %s1339_s2 = inlined_call_operand.hbm [shape: f32[8,80], index: 2, kind: output, shape index: {}]  }
   0x1   :  { %v1058_v0 = vld [vmem:[%s1337_s0 + $0x10] sm:$0xff]  ;;  %960 = vset.pattern.permute.xlu0 %v1024_v1  ;;  %954 = vset.pattern.permute.xlu1 %v1025_v2  ;;  %v1071_v4 = vld [vmem:[%s1337_s0 + $0x18] sm:$0xff]  ;;  %v13_v7 = vld [vmem:[%s1337_s0] sm:$0xff]  ;;  %v1028_v8 = vmov 0.0   ;;  %v1029_v9 = vmov 2  }
   0x2   :  { %vm200_vm0 = vcmp.ne.s32.totalorder %v1058_v0, 0  ;;  %271 = vperm.xlu0 %960, %v1058_v0   ;;  %vm378_vm1 = vcmp.ne.s32.totalorder %v1071_v4, 0  ;;  %878 = vmatprep.subr.bf16.mxu0 %v1028_v8 }
   0x3   :  { %v1065_v3 = vsel %vm200_vm0, 1, %v1025_v2  ;;  %890 = vmatprep.subr.bf16.mxu1 %v1028_v8  ;;  %v1089_v10 = vsel %vm378_vm1, 1, %v1025_v2 }
   0x4   :  { %203 = vperm.xlu1 %954, %v1065_v3  }
   0x6   :  { %963 = vset.pattern.permute.xlu0 %v1026_v5 }
   0x7   :  { %287 = vperm.xlu0 %963, %v1065_v3  }
   0x8   :  { %955 = vset.pattern.permute.xlu1 %v1027_v6 }
   0x9   :  { %211 = vperm.xlu1 %955, %v1058_v0  }
   0xb   :  { %964 = vset.pattern.permute.xlu0 %v1025_v2 }
   0xc   :  { %21 = vperm.xlu0 %964, %v13_v7  }
   0xd   :  { %956 = vset.pattern.permute.xlu1 %v1029_v9 }
   0xe   :  { %223 = vperm.xlu1 %956, %v1058_v0  }
  0x10   :  { %197 = vperm.xlu0 %964, %v1058_v0  }
  0x12   :  { %227 = vperm.xlu1 %956, %v1065_v3  }
  0x13   :  { %7 = vsyncpa [#allocation3], 0  ;;  %v1030_v11 = vmov 3   ;;  %v1096_v12 = vld [vmem:[%s1337_s0 + $0x20] sm:$0xff]  ;;  %v1031_v13 = vmov 4   ;;  %vm63_vm2 = vcmask 1045504   ;;  %v18_v32 = vlaneseq }
  0x14   :  { %381 = vperm.xlu0 %964, %v1089_v10   ;;  %v982_v14 = vld [vmem:[%s1338_s1 + $0x18] sm:$0x7f]   ;;  %vm64_vm3 = vcmask 1046528   ;;  %v1032_v15 = vmov 65535   ;;  %v1033_v17 = vmov 5   ;;  %v984_v22 = vld [vmem:[%s1338_s1 + $0x10] sm:$0xff]  }
  0x15   :  { %v65_v16 = vsel %vm63_vm2, 4294967295, %v1032_v15  ;;  %v983_v20 = vld [vmem:[%s1338_s1 + $0x38] sm:$0x7f]   ;;  %v985_v23 = vld [vmem:[%s1338_s1 + $0x30] sm:$0xff]   ;;  %v986_v24 = vld [vmem:[%s1338_s1 + $0x8] sm:$0xff]   ;;  %vm556_vm4 = vcmp.ne.s32.totalorder %v1096_v12, 0 }
  0x16   :  { %957 = vset.pattern.permute.xlu1 %v1030_v11  ;;  %v1108_v18 = vsel %vm64_vm3, %v65_v16, 0  ;;  %v987_v25 = vld [vmem:[%s1338_s1 + $0x28] sm:$0xff]   ;;  %v988_v26 = vld [vmem:[%s1338_s1] sm:$0xff]   ;;  %v557_v29 = vsel %vm556_vm4, 1, %v1025_v2  ;;  %vm1034_vm5 = vmmov 0   ;;  %v1200_v36 = vand.u32 127, %v18_v32 }
  0x17   :  { %239 = vperm.xlu1 %957, %v1065_v3   ;;  %v68_v19 = vand.u32 %v982_v14, %v1108_v18  ;;  %v154_v21 = vand.u32 %v983_v20, %v1108_v18  ;;  %v989_v27 = vld [vmem:[%s1338_s1 + $0x20] sm:$0xff]   ;;  %v14_v28 = vld [vmem:[%s1337_s0 + $0x8] sm:$0xff]  ;;  %886 = vmatprep.mubr.msk.bf16.mxu0 %vm1034_vm5, %v1028_v8  ;;  %v990_v35 = vld [vmem:[%s1338_s1 + $0x58] sm:$0x7f]   ;;  %vm59_vm7 = vcmask 498688   ;;  %s1036_s30 = smov 32  }
  0x18   :  { %553 = vperm.xlu0 %964, %v1096_v12   ;;  %898 = vmatprep.mubr.msk.bf16.mxu1 %vm1034_vm5, %v1028_v8  ;;  %v331_v40 = vand.u32 %v990_v35, %v1108_v18  ;;  %v991_v44 = vld [vmem:[%s1338_s1 + $0x50] sm:$0xff]   ;;  %v992_v47 = vld [vmem:[%s1338_s1 + $0x48] sm:$0xff]   ;;  %v993_v49 = vld [vmem:[%s1338_s1 + $0x40] sm:$0xff]   ;;  %s1037_s3 = smov 48   ;;  %s1038_s4 = smov 64  }
  0x19   :  { %879 = vmatpush3.bf16.msra.mxu0 %v68_v19  ;;  %891 = vmatpush3.bf16.msra.mxu1 %v154_v21  ;;  %v994_v61 = vld [vmem:[%s1338_s1 + $0x78] sm:$0x7f]   ;;  %s1039_s5 = smov [#allocation2]  }
  0x1a   :  { %880 = vmatprep.subr.bf16.mxu0 %v1028_v8  ;;  %892 = vmatprep.subr.bf16.mxu1 %v1028_v8  ;;  %v996_v21 = vld [vmem:[%s1338_s1 + $0x98] sm:$0x7f]   ;;  %s762_s6 = sshll.u32 %s1039_s5, 4  ;;  %s763_s6 = int_to_ptr.vmem [resolvable:$true] %s762_s6 }
  0x1b   :  { %958 = vset.pattern.permute.xlu1 %v1031_v13  ;;  %s1002_s0 = scalar_lea.vmem %s763_s6, 128  ;;  %p1007_p1 = scmp.lt.s32.totalorder %s763_s6, %s763_s6 }
  0x1c   :  { %247 = vperm.xlu1 %958, %v1058_v0   ;;  %967 = vset.pattern.permute.xlu0 %v1027_v6  ;;  %p1003_p0 = scmp.ne.s32.totalorder %s763_s6, %s1002_s0  ;;  %p1008_p2 = scmp.lt.s32.totalorder %s1002_s0, %s1002_s0 }
  0x1d   :  { %215 = vperm.xlu0 %967, %v1065_v3   ;;  %881 = vmatpush3.bf16.msra.mxu0 %v984_v22 }
  0x1e   :  { %882 = vmatprep.subr.bf16.mxu0 %v1028_v8  ;;  %893 = vmatpush3.bf16.msra.mxu1 %v985_v23  ;;  %p1009_p3 = por %p1008_p2, %p1007_p1 }
  0x1f   :  { %894 = vmatprep.subr.bf16.mxu1 %v1028_v8 }
  0x20   :  { %959 = vset.pattern.permute.xlu1 %v1033_v17  ;;  %p1010_p4 = pnand %p1009_p3, %p1003_p0 }
  0x21   :  { %259 = vperm.xlu1 %959, %v1058_v0   ;;  %567 = vperm.xlu0 %967, %v1096_v12  }
  0x22   :  { %883 = vmatpush3.bf16.msra.mxu0 %v986_v24  ;;  %895 = vmatpush3.bf16.msra.mxu1 %v987_v25  ;;  %v999_v25 = vld [vmem:[%s1338_s1 + $0x60] sm:$0xff]  }
  0x23   :  { %884 = vmatprep.subr.bf16.mxu0 %v1028_v8  ;;  %896 = vmatprep.subr.bf16.mxu1 %v1028_v8 }
  0x25   :  { %263 = vperm.xlu1 %959, %v1065_v3   ;;  %971 = vset.pattern.permute.xlu0 %v1029_v9 }
  0x26   :  { %405 = vperm.xlu0 %971, %v1089_v10   ;;  %885 = vmatpush3.bf16.msra.mxu0 %v988_v26 }
  0x27   :  { %902 = vmatprep.subr.bf16.mxu0 %v1028_v8  ;;  %897 = vmatpush3.bf16.msra.mxu1 %v989_v27  ;;  %v687_v27 = vand.u32 %v996_v21, %v1108_v18 }
  0x28   :  { %914 = vmatprep.subr.bf16.mxu1 %v1028_v8 }
  0x29   :  { %961 = vset.pattern.permute.xlu1 %v1024_v1 }
  0x2a   :  { %275 = vperm.xlu1 %961, %v1065_v3   ;;  %972 = vset.pattern.permute.xlu0 %v1030_v11 }
  0x2b   :  { %235 = vperm.xlu0 %972, %v1058_v0  }
  0x2e   :  { %962 = vset.pattern.permute.xlu1 %v1026_v5 }
  0x2f   :  { %283 = vperm.xlu1 %962, %v1058_v0   ;;  %413 = vperm.xlu0 %972, %v1071_v4  }
  0x33   :  { %965 = vset.pattern.permute.xlu1 %v1025_v2  ;;  %595 = vperm.xlu0 %972, %v557_v29  }
  0x34   :  { %111 = vperm.xlu1 %965, %v14_v28  }
  0x37   :  { %974 = vset.pattern.permute.xlu0 %v1031_v13 }
  0x38   :  { %375 = vperm.xlu1 %965, %v1071_v4   ;;  %251 = vperm.xlu0 %974, %v1065_v3   ;;  %v509_v3 = vand.u32 %v994_v61, %v1108_v18 }
  0x3c   :  { %966 = vset.pattern.permute.xlu1 %v1027_v6  ;;  %429 = vperm.xlu0 %974, %v1089_v10  }
  0x3d   :  { %389 = vperm.xlu1 %966, %v1071_v4  }
  0x40   :  { %976 = vset.pattern.permute.xlu0 %v1033_v17 }
  0x41   :  { %393 = vperm.xlu1 %966, %v1089_v10   ;;  %437 = vperm.xlu0 %976, %v1071_v4  }
  0x45   :  { %968 = vset.pattern.permute.xlu1 %v1025_v2  ;;  %619 = vperm.xlu0 %976, %v557_v29  }
  0x46   :  { %559 = vperm.xlu1 %968, %v557_v29  }
  0x49   :  { %979 = vset.pattern.permute.xlu0 %v1024_v1 }
  0x4a   :  { %969 = vset.pattern.permute.xlu1 %v1027_v6  ;;  %453 = vperm.xlu0 %979, %v1089_v10  }
  0x4b   :  { %571 = vperm.xlu1 %969, %v557_v29  }
  0x4e   :  { %980 = vset.pattern.permute.xlu0 %v1026_v5 }
  0x4f   :  { %970 = vset.pattern.permute.xlu1 %v1029_v9  ;;  %461 = vperm.xlu0 %980, %v1071_v4  }
  0x50   :  { %401 = vperm.xlu1 %970, %v1071_v4  }
  0x53   :  { %643 = vperm.xlu0 %980, %v557_v29  }
  0x54   :  { %579 = vperm.xlu1 %970, %v1096_v12  }
  0x58   :  { %583 = vperm.xlu1 %970, %v557_v29  }
  0x5c   :  { %973 = vset.pattern.permute.xlu1 %v1030_v11  ;;  %v995_v11 = vld [vmem:[%s1338_s1 + $0x70] sm:$0xff]  }
  0x5d   :  { %417 = vperm.xlu1 %973, %v1089_v10  }
  0x61   :  { %591 = vperm.xlu1 %973, %v1096_v12  }
  0x65   :  { %975 = vset.pattern.permute.xlu1 %v1031_v13 }
  0x66   :  { %425 = vperm.xlu1 %975, %v1071_v4  }
  0x6a   :  { %603 = vperm.xlu1 %975, %v1096_v12  }
  0x6e   :  { %607 = vperm.xlu1 %975, %v557_v29  }
  0x72   :  { %977 = vset.pattern.permute.xlu1 %v1033_v17  ;;  %v997_v17 = vld [vmem:[%s1338_s1 + $0x68] sm:$0xff]  }
  0x73   :  { %441 = vperm.xlu1 %977, %v1089_v10  }
  0x77   :  { %615 = vperm.xlu1 %977, %v1096_v12  }
  0x7b   :  { %978 = vset.pattern.permute.xlu1 %v1024_v1 }
  0x7c   :  { %449 = vperm.xlu1 %978, %v1071_v4  }
  0x7d   :  { %v1192_v30 = vpop.permute.xlu0 %271 }
  0x7f   :  { %v204_v31 = vpop.permute.xlu1 %203 }
  0x80   :  { %627 = vperm.xlu1 %978, %v1096_v12   ;;  %vm205_vm12 = vcmp.eq.s32.totalorder %v204_v31, 1  ;;  %v1000_v31 = vld [vmem:[%s1338_s1 + $0x88] sm:$0xff]  }
  0x82   :  { %v1195_v33 = vpop.permute.xlu0 %287 }
  0x84   :  { %v212_v34 = vpop.permute.xlu1 %211  ;;  %631 = vperm.xlu1 %978, %v557_v29  }
  0x85   :  { %vm213_vm9 = vcmp.eq.s32.totalorder %v1200_v36, %v212_v34 }
  0x87   :  { %v22_v37 = vpop.permute.xlu0 %21 }
  0x88   :  { %981 = vset.pattern.permute.xlu1 %v1026_v5  ;;  %vm23_vm6 = vcmp.eq.s32.totalorder %v1200_v36, %v22_v37 }
  0x89   :  { %v224_v38 = vpop.permute.xlu1 %223  ;;  %465 = vperm.xlu1 %981, %v1089_v10   ;;  %v770_v39 = vsel %vm23_vm6, 1.0, %v1028_v8 }
  0x8a   :  { %v35_v41 = vpack.c.bf16 %v770_v39, %v770_v39  ;;  %vm225_vm0 = vcmp.eq.s32.totalorder %v1200_v36, %v224_v38  ;;  %v1001_v38 = vld [vmem:[%s1338_s1 + $0x80] sm:$0xff]  }
  0x8b   :  { %v198_v42 = vpop.permute.xlu0 %197 }
  0x8c   :  { %887 = vmatmul.mubr.msk.bf16.vlgmr.msra.gmra.mxu0 %vm59_vm7, %v35_v41  ;;  %vm199_vm10 = vcmp.eq.s32.totalorder %v1200_v36, %v198_v42 }
  0x8d   :  { %v228_v43 = vpop.permute.xlu1 %227  ;;  %639 = vperm.xlu1 %981, %v1096_v12   ;;  %903 = vmatpush3.bf16.msra.mxu0 %v331_v40  ;;  %vm206_vm13 = vmand %vm199_vm10, %vm205_vm12 }
  0x8e   :  { %910 = vmatprep.mubr.msk.bf16.mxu0 %vm1034_vm5, %v1028_v8  ;;  %904 = vmatprep.subr.bf16.mxu0 %v1028_v8  ;;  %vm229_vm14 = vcmp.eq.s32.totalorder %v228_v43, 1  ;;  %v790_v62 = vsel %vm206_vm13, 1.0, %v1028_v8 }
  0x8f   :  { %v1215_v45 = vpop.permute.xlu0 %381  ;;  %vm230_vm1 = vmand %vm225_vm0, %vm229_vm14 }
  0x90   :  { %v792_v5 = vsel %vm230_vm1, 1.0, %v1028_v8 }
  0x91   :  { %905 = vmatpush3.bf16.msra.mxu0 %v991_v44 }
  0x92   :  { %v240_v46 = vpop.permute.xlu1 %239  ;;  %906 = vmatprep.subr.bf16.mxu0 %v1028_v8 }
  0x93   :  { %v1221_v48 = vpop.permute.xlu0 %553  ;;  %vm241_vm2 = vcmp.eq.s32.totalorder %v240_v46, 1 }
  0x95   :  { %907 = vmatpush3.bf16.msra.mxu0 %v992_v47 }
  0x96   :  { %908 = vmatprep.subr.bf16.mxu0 %v1028_v8 }
  0x97   :  { %v248_v50 = vpop.permute.xlu1 %247 }
  0x98   :  { %v216_v51 = vpop.permute.xlu0 %215  ;;  %vm249_vm10 = vcmp.eq.s32.totalorder %v1200_v36, %v248_v50 }
  0x99   :  { %909 = vmatpush3.bf16.msra.mxu0 %v993_v49  ;;  %vm217_vm8 = vcmp.eq.s32.totalorder %v216_v51, 1 }
  0x9a   :  { %926 = vmatprep.subr.bf16.mxu0 %v1028_v8  ;;  %vm218_vm11 = vmand %vm213_vm9, %vm217_vm8  ;;  %vm273_vm9 = vcmp.eq.s32.totalorder %v1200_v36, %v1192_v30  ;;  %v998_v30 = vld [vmem:[%s1338_s1 + $0x90] sm:$0xff]   ;;  %s1035_s1 = smov 16  }
  0x9b   :  { %v791_v60 = vsel %vm218_vm11, 1.0, %v1028_v8 }
  0x9c   :  { %v260_v52 = vpop.permute.xlu1 %259  ;;  %v1228_v53 = vpop.permute.xlu0 %567  ;;  %v221_v1 = vadd.f32 %v791_v60, %v790_v62 }
  0x9d   :  { %vm261_vm8 = vcmp.eq.s32.totalorder %v1200_v36, %v260_v52 }
  0x9e   :  { %v233_v9 = vadd.f32 %v792_v5, %v221_v1 }
  0xa0   :  { %v264_v54 = vpop.permute.xlu1 %263 }
  0xa1   :  { %v1230_v55 = vpop.permute.xlu0 %405  ;;  %vm265_vm6 = vcmp.eq.s32.totalorder %v264_v54, 1 }
  0xa2   :  { %vm266_vm11 = vmand %vm261_vm8, %vm265_vm6  ;;  %vm569_vm8 = vcmp.eq.s32.totalorder %v1200_v36, %v1228_v53 }
  0xa3   :  { %v795_v16 = vsel %vm266_vm11, 1.0, %v1028_v8 }
  0xa5   :  { %v276_v56 = vpop.permute.xlu1 %275 }
  0xa6   :  { %v236_v57 = vpop.permute.xlu0 %235  ;;  %vm277_vm12 = vcmp.eq.s32.totalorder %v276_v56, 1 }
  0xa7   :  { %vm237_vm15 = vcmp.eq.s32.totalorder %v1200_v36, %v236_v57  ;;  %vm278_vm1 = vmand %vm273_vm9, %vm277_vm12  ;;  %vm383_vm9 = vcmp.eq.s32.totalorder %v1215_v45, 1 }
  0xa8   :  { %vm242_vm3 = vmand %vm237_vm15, %vm241_vm2  ;;  %vm289_vm15 = vcmp.eq.s32.totalorder %v1195_v33, 1  ;;  %v796_v20 = vsel %vm278_vm1, 1.0, %v1028_v8 }
  0xa9   :  { %v793_v6 = vsel %vm242_vm3, 1.0, %v1028_v8  ;;  %vm555_vm3 = vcmp.eq.s32.totalorder %v1200_v36, %v1221_v48 }
  0xaa   :  { %v284_v58 = vpop.permute.xlu1 %283  ;;  %v1234_v59 = vpop.permute.xlu0 %413  ;;  %v245_v12 = vadd.f32 %v793_v6, %v233_v9 }
  0xab   :  { %vm285_vm0 = vcmp.eq.s32.totalorder %v1200_v36, %v284_v58 }
  0xac   :  { %vm290_vm2 = vmand %vm285_vm0, %vm289_vm15  ;;  %vm407_vm0 = vcmp.eq.s32.totalorder %v1230_v55, 1 }
  0xad   :  { %v797_v24 = vsel %vm290_vm2, 1.0, %v1028_v8 }
  0xae   :  { %v1243_v0 = vpop.permute.xlu0 %595 }
  0xaf   :  { %v112_v63 = vpop.permute.xlu1 %111 }
  0xb0   :  { %vm113_vm4 = vcmp.eq.s32.totalorder %v1200_v36, %v112_v63 }
  0xb1   :  { %v776_v2 = vsel %vm113_vm4, 1.0, %v1028_v8 }
  0xb2   :  { %v126_v4 = vpack.c.bf16 %v776_v2, %v776_v2 }
  0xb3   :  { %v376_v7 = vpop.permute.xlu1 %375  ;;  %v252_v10 = vpop.permute.xlu0 %251 }
  0xb4   :  { %899 = vmatmul.mubr.msk.bf16.vlgmr.msra.gmra.mxu1 %vm59_vm7, %v126_v4  ;;  %vm253_vm13 = vcmp.eq.s32.totalorder %v252_v10, 1 }
  0xb5   :  { %915 = vmatpush3.bf16.msra.mxu1 %v509_v3  ;;  %922 = vmatprep.mubr.msk.bf16.mxu1 %vm1034_vm5, %v1028_v8  ;;  %vm254_vm14 = vmand %vm249_vm10, %vm253_vm13  ;;  %vm377_vm10 = vcmp.eq.s32.totalorder %v1200_v36, %v376_v7 }
  0xb6   :  { %916 = vmatprep.subr.bf16.mxu1 %v1028_v8  ;;  %v794_v13 = vsel %vm254_vm14, 1.0, %v1028_v8  ;;  %vm384_vm15 = vmand %vm377_vm10, %vm383_vm9 }
  0xb7   :  { %v257_v14 = vadd.f32 %v794_v13, %v245_v12  ;;  %v811_v39 = vsel %vm384_vm15, 1.0, %v1028_v8  ;;  %v430_v56 = vpop.permute.xlu0 %429 }
  0xb8   :  { %v390_v15 = vpop.permute.xlu1 %389 }
  0xb9   :  { %917 = vmatpush3.bf16.msra.mxu1 %v995_v11  ;;  %v269_v19 = vadd.f32 %v795_v16, %v257_v14  ;;  %vm391_vm11 = vcmp.eq.s32.totalorder %v1200_v36, %v390_v15 }
  0xba   :  { %918 = vmatprep.subr.bf16.mxu1 %v1028_v8 }
  0xbb   :  { %v281_v22 = vadd.f32 %v796_v20, %v269_v19 }
  0xbc   :  { %v394_v23 = vpop.permute.xlu1 %393  ;;  %v438_v58 = vpop.permute.xlu0 %437 }
  0xbd   :  { %919 = vmatpush3.bf16.msra.mxu1 %v997_v17  ;;  %v293_v26 = vadd.f32 %v797_v24, %v281_v22  ;;  %vm395_vm6 = vcmp.eq.s32.totalorder %v394_v23, 1 }
  0xbe   :  { %920 = vmatprep.subr.bf16.mxu1 %v1028_v8  ;;  %vm396_vm13 = vmand %vm391_vm11, %vm395_vm6  ;;  %vm597_vm11 = vcmp.eq.s32.totalorder %v1243_v0, 1 }
  0xbf   :  { %v303_v28 = vpack.c.bf16 %v293_v26, %v293_v26  ;;  %v812_v34 = vsel %vm396_vm13, 1.0, %v1028_v8 }
  0xc0   :  { %v399_v40 = vadd.f32 %v812_v34, %v811_v39  ;;  %v620_v60 = vpop.permute.xlu0 %619 }
  0xc1   :  { %v560_v29 = vpop.permute.xlu1 %559  ;;  %921 = vmatpush3.bf16.msra.mxu1 %v999_v25  ;;  %911 = vmatmul.mubr.msk.bf16.vlgmr.msra.gmra.mxu0 %vm59_vm7, %v303_v28 }
  0xc2   :  { %vm561_vm4 = vcmp.eq.s32.totalorder %v560_v29, 1  ;;  %927 = vmatpush3.bf16.msra.mxu0 %v687_v27  ;;  %934 = vmatprep.mubr.msk.bf16.mxu0 %vm1034_vm5, %v1028_v8 }
  0xc3   :  { %928 = vmatprep.subr.bf16.mxu0 %v1028_v8  ;;  %vm562_vm12 = vmand %vm555_vm3, %vm561_vm4  ;;  %vm415_vm4 = vcmp.eq.s32.totalorder %v1200_v36, %v1234_v59 }
  0xc4   :  { %v832_v32 = vsel %vm562_vm12, 1.0, %v1028_v8 }
  0xc5   :  { %v454_v62 = vpop.permute.xlu0 %453 }
  0xc6   :  { %v572_v18 = vpop.permute.xlu1 %571  ;;  %929 = vmatpush3.bf16.msra.mxu0 %v998_v30 }
  0xc7   :  { %vm573_vm14 = vcmp.eq.s32.totalorder %v572_v18, 1  ;;  %930 = vmatprep.subr.bf16.mxu0 %v1028_v8 }
  0xc8   :  { %vm574_vm5 = vmand %vm569_vm8, %vm573_vm14 }
  0xc9   :  { %v833_v33 = vsel %vm574_vm5, 1.0, %v1028_v8  ;;  %vm431_vm5 = vcmp.eq.s32.totalorder %v430_v56, 1 }
  0xca   :  { %v577_v35 = vadd.f32 %v833_v33, %v832_v32  ;;  %931 = vmatpush3.bf16.msra.mxu0 %v1000_v31  ;;  %v462_v2 = vpop.permute.xlu0 %461 }
  0xcb   :  { %v402_v37 = vpop.permute.xlu1 %401  ;;  %932 = vmatprep.subr.bf16.mxu0 %v1028_v8 }
  0xcc   :  { %vm403_vm1 = vcmp.eq.s32.totalorder %v1200_v36, %v402_v37 }
  0xcd   :  { %vm408_vm2 = vmand %vm403_vm1, %vm407_vm0  ;;  %vm439_vm0 = vcmp.eq.s32.totalorder %v1200_v36, %v438_v58 }
  0xce   :  { %v813_v41 = vsel %vm408_vm2, 1.0, %v1028_v8  ;;  %933 = vmatpush3.bf16.msra.mxu0 %v1001_v38  ;;  %v644_v13 = vpop.permute.xlu0 %643 }
  0xcf   :  { %v411_v42 = vadd.f32 %v813_v41, %v399_v40  ;;  %v580_v43 = vpop.permute.xlu1 %579 }
  0xd0   :  { %vm581_vm6 = vcmp.eq.s32.totalorder %v1200_v36, %v580_v43 }
  0xd3   :  { %v584_v44 = vpop.permute.xlu1 %583 }
  0xd4   :  { %vm585_vm3 = vcmp.eq.s32.totalorder %v584_v44, 1 }
  0xd5   :  { %vm586_vm8 = vmand %vm581_vm6, %vm585_vm3 }
  0xd6   :  { %v834_v46 = vsel %vm586_vm8, 1.0, %v1028_v8 }
  0xd7   :  { %v589_v50 = vadd.f32 %v834_v46, %v577_v35 }
  0xd8   :  { %v418_v45 = vpop.permute.xlu1 %417 }
  0xd9   :  { %vm419_vm9 = vcmp.eq.s32.totalorder %v418_v45, 1 }
  0xda   :  { %vm420_vm10 = vmand %vm415_vm4, %vm419_vm9  ;;  %vm455_vm4 = vcmp.eq.s32.totalorder %v454_v62, 1 }
  0xdb   :  { %v814_v47 = vsel %vm420_vm10, 1.0, %v1028_v8 }
  0xdc   :  { %v423_v48 = vadd.f32 %v814_v47, %v411_v42  ;;  %v592_v49 = vpop.permute.xlu1 %591 }
  0xdd   :  { %vm593_vm12 = vcmp.eq.s32.totalorder %v1200_v36, %v592_v49 }
  0xde   :  { %vm598_vm13 = vmand %vm593_vm12, %vm597_vm11  ;;  %vm621_vm11 = vcmp.eq.s32.totalorder %v620_v60, 1 }
  0xdf   :  { %v835_v51 = vsel %vm598_vm13, 1.0, %v1028_v8 }
  0xe0   :  { %v601_v52 = vadd.f32 %v835_v51, %v589_v50 }
  0xe1   :  { %v426_v53 = vpop.permute.xlu1 %425 }
  0xe2   :  { %vm427_vm14 = vcmp.eq.s32.totalorder %v1200_v36, %v426_v53 }
  0xe3   :  { %vm432_vm1 = vmand %vm427_vm14, %vm431_vm5 }
  0xe4   :  { %v815_v0 = vsel %vm432_vm1, 1.0, %v1028_v8 }
  0xe5   :  { %v604_v54 = vpop.permute.xlu1 %603  ;;  %v435_v4 = vadd.f32 %v815_v0, %v423_v48 }
  0xe6   :  { %vm605_vm6 = vcmp.eq.s32.totalorder %v1200_v36, %v604_v54 }
  0xe9   :  { %v608_v55 = vpop.permute.xlu1 %607 }
  0xea   :  { %vm609_vm2 = vcmp.eq.s32.totalorder %v608_v55, 1 }
  0xeb   :  { %vm610_vm9 = vmand %vm605_vm6, %vm609_vm2 }
  0xec   :  { %v836_v5 = vsel %vm610_vm9, 1.0, %v1028_v8  ;;  %vm750_vm9 = vcmask 392192  }
  0xed   :  { %v613_v11 = vadd.f32 %v836_v5, %v601_v52 }
  0xee   :  { %v442_v57 = vpop.permute.xlu1 %441 }
  0xef   :  { %vm443_vm15 = vcmp.eq.s32.totalorder %v442_v57, 1 }
  0xf0   :  { %vm444_vm8 = vmand %vm439_vm0, %vm443_vm15  ;;  %vm463_vm15 = vcmp.eq.s32.totalorder %v1200_v36, %v462_v2 }
  0xf1   :  { %v816_v3 = vsel %vm444_vm8, 1.0, %v1028_v8  ;;  %vm748_vm8 = vcmask 261120  }
  0xf2   :  { %v616_v59 = vpop.permute.xlu1 %615  ;;  %v447_v7 = vadd.f32 %v816_v3, %v435_v4 }
  0xf3   :  { %vm617_vm10 = vcmp.eq.s32.totalorder %v1200_v36, %v616_v59 }
  0xf4   :  { %vm622_vm14 = vmand %vm617_vm10, %vm621_vm11  ;;  %vm752_vm10 = vcmask 523264   ;;  %vm754_vm11 = vcmask 654336  }
  0xf5   :  { %v837_v10 = vsel %vm622_vm14, 1.0, %v1028_v8 }
  0xf6   :  { %v625_v16 = vadd.f32 %v837_v10, %v613_v11 }
  0xf7   :  { %v450_v61 = vpop.permute.xlu1 %449 }
  0xf8   :  { %vm451_vm3 = vcmp.eq.s32.totalorder %v1200_v36, %v450_v61 }
  0xf9   :  { %vm456_vm12 = vmand %vm451_vm3, %vm455_vm4  ;;  %vm645_vm3 = vcmp.eq.s32.totalorder %v644_v13, 1 }
  0xfa   :  { %v817_v6 = vsel %vm456_vm12, 1.0, %v1028_v8 }
  0xfb   :  { %v628_v63 = vpop.permute.xlu1 %627  ;;  %v459_v12 = vadd.f32 %v817_v6, %v447_v7 }
  0xfc   :  { %vm629_vm5 = vcmp.eq.s32.totalorder %v1200_v36, %v628_v63 }
  0xff   :  { %v632_v1 = vpop.permute.xlu1 %631 }
 0x100   :  { %vm633_vm13 = vcmp.eq.s32.totalorder %v632_v1, 1 }
 0x101   :  { %vm634_vm0 = vmand %vm629_vm5, %vm633_vm13 }
 0x102   :  { %v838_v14 = vsel %vm634_vm0, 1.0, %v1028_v8 }
 0x103   :  { %v637_v20 = vadd.f32 %v838_v14, %v625_v16 }
 0x104   :  { %v466_v9 = vpop.permute.xlu1 %465 }
 0x105   :  { %vm467_vm1 = vcmp.eq.s32.totalorder %v466_v9, 1 }
 0x106   :  { %vm468_vm2 = vmand %vm463_vm15, %vm467_vm1 }
 0x107   :  { %v818_v15 = vsel %vm468_vm2, 1.0, %v1028_v8 }
 0x108   :  { %v471_v17 = vadd.f32 %v818_v15, %v459_v12  ;;  %v640_v19 = vpop.permute.xlu1 %639 }
 0x109   :  { %vm641_vm4 = vcmp.eq.s32.totalorder %v1200_v36, %v640_v19 }
 0x10a   :  { %v481_v21 = vpack.c.bf16 %v471_v17, %v471_v17  ;;  %vm646_vm6 = vmand %vm641_vm4, %vm645_vm3 }
 0x10b   :  { %v839_v22 = vsel %vm646_vm6, 1.0, %v1028_v8 }
 0x10c   :  { %v649_v23 = vadd.f32 %v839_v22, %v637_v20  ;;  %923 = vmatmul.mubr.msk.bf16.vlgmr.msra.gmra.mxu1 %vm59_vm7, %v481_v21 }
 0x10e   :  { %v659_v24 = vpack.c.bf16 %v649_v23, %v649_v23 }
 0x110   :  { %935 = vmatmul.mubr.msk.bf16.vlgmr.msra.gmra.mxu0 %vm59_vm7, %v659_v24  ;;  %vm746_vm7 = vcmask 130048  }
 0x14c   :  { %v104_v25 = vpop.f32.mrf.mxu0 }
 0x14e   :  { %v888_v26 = vpop.f32.mrf.mxu0 }
 0x150   :  { %v107_v27 = vpop.f32.mrf.mxu0 }
 0x152   :  { %v889_v28 = vpop.f32.mrf.mxu0 }
 0x174   :  { %v190_v29 = vpop.f32.mrf.mxu1 }
 0x175   :  { %731 = vrot.lane.b32.xlu1 %v190_v29, %s1035_s1 }
 0x176   :  { %v900_v30 = vpop.f32.mrf.mxu1 }
 0x178   :  { %v193_v36 = vpop.f32.mrf.mxu1 }
 0x17a   :  { %v901_v18 = vpop.f32.mrf.mxu1 }
 0x181   :  { %v367_v31 = vpop.f32.mrf.mxu0 }
 0x182   :  { %v373_v32 = vmul.f32 0.125, %v367_v31 }
 0x183   :  { %v912_v33 = vpop.f32.mrf.mxu0 }
 0x184   :  { %735 = vrot.lane.b32.xlu0 %v373_v32, %s1036_s30 }
 0x185   :  { %v370_v8 = vpop.f32.mrf.mxu0 }
 0x187   :  { %v913_v34 = vpop.f32.mrf.mxu0 }
 0x1cc   :  { %v545_v35 = vpop.f32.mrf.mxu1 }
 0x1cd   :  { %v551_v37 = vmul.f32 0.125, %v545_v35 }
 0x1ce   :  { %v924_v38 = vpop.f32.mrf.mxu1 }
 0x1cf   :  { %739 = vrot.lane.b32.xlu1 %v551_v37, %s1037_s3 }
 0x1d0   :  { %v548_v39 = vpop.f32.mrf.mxu1  ;;  %v723_v40 = vpop.f32.mrf.mxu0 }
 0x1d1   :  { %v729_v41 = vmul.f32 0.125, %v723_v40 }
 0x1d2   :  { %v925_v42 = vpop.f32.mrf.mxu1  ;;  %v936_v43 = vpop.f32.mrf.mxu0 }
 0x1d3   :  { %743 = vrot.lane.b32.xlu0 %v729_v41, %s1038_s4 }
 0x1d4   :  { %v726_v44 = vpop.f32.mrf.mxu0 }
 0x1d6   :  { %v937_v45 = vpop.f32.mrf.mxu0 }
 0x1e7   :  { %v732_v46 = vpop.permute.xlu1 %731 }
 0x1e8   :  { %v747_v49 = vsel %vm746_vm7, %v104_v25, %v732_v46 }
 0x1f6   :  { %v736_v47 = vpop.permute.xlu0 %735 }
 0x1f7   :  { %v749_v50 = vsel %vm748_vm8, %v747_v49, %v736_v47 }
 0x241   :  { %v740_v48 = vpop.permute.xlu1 %739 }
 0x242   :  { %v751_v51 = vsel %vm750_vm9, %v749_v50, %v740_v48 }
 0x245   :  { %v744_v52 = vpop.permute.xlu0 %743 }
 0x246   :  { %v753_v53 = vsel %vm752_vm10, %v751_v51, %v744_v52 }
 0x247   :  { %755 = vst.msk [vmem:[#allocation2] sm:$0xff] %vm754_vm11, %v753_v53 }
 0x248   :  { %1013 = shalt.err (!%p1010_p4)
}
 0x249   :  { %765 = dma.vmem_to_hbm [thread:$0]  %s763_s6, 128, %s1339_s2, [#allocation3]  }
 0x24a   :  { %1022 = dma.done.wait [#allocation3], 128  }
 0x24b   :  { %1023 = vsyncadd [#allocation3], 4294967168 }
 0x24c   :  { %769 = vsyncpa [#allocation3], 1 }

</bundles_post_ra>
